<compile_context>
chip_gen: v7x
topology: tpu7x:2x2x1
jax: 0.10.0
libtpu: 0.0.40
codegen_flags: <defaults>
</compile_context>

<pallas_src>
import functools

import jax
import jax.numpy as jnp
import numpy as np
from jax.experimental import pallas as pl
from jax.experimental.pallas import tpu as pltpu


# ----------------------------------------------------------------------------
# Fused MAML inner-loop kernel
# ----------------------------------------------------------------------------
def _maml_inner_kernel(xs_ref, ys_ref, xq_ref, yq_ref, w0_ref, b0_ref,
                       loss_ref, corr_ref, dwq_ref, dbq_ref,
                       fw_w_ref, fw_b_ref, *, base_lr):
    """Grid = (task, inner_step).

    Per grid point:
      step==0 : zero metric slabs, init fast weights from meta params,
                query eval with the ORIGINAL meta params -> metrics row 0.
      every k : support fwd+bwd at current fast weights, fw -= base_lr*grad,
                query eval at updated fast weights -> metrics row k+1.
      k==last : additionally compute the query-loss gradient at the final
                fast weights (first-order MAML meta-gradient).
    """
    k = pl.program_id(1)
    last = pl.num_programs(1) - 1
    n_classes = w0_ref.shape[1]

    xs = xs_ref[0]          # (SHOT, D)  f32
    ys = ys_ref[0]          # (SHOT, 1)  i32
    xq = xq_ref[0]          # (QUERY, D) f32
    yq = yq_ref[0]          # (QUERY, 1) i32

    def forward_logits(x, w, b):
        return jnp.dot(x, w, preferred_element_type=jnp.float32) + b

    def softmax_parts(logits):
        row_max = jnp.max(logits, axis=-1, keepdims=True)
        shifted = logits - row_max
        e = jnp.exp(shifted)
        denom = jnp.sum(e, axis=-1, keepdims=True)
        return row_max, shifted, e, denom

    def loss_and_correct(logits, y):
        row_max, shifted, _, denom = softmax_parts(logits)
        log_probs = shifted - jnp.log(denom)
        classes = jax.lax.broadcasted_iota(jnp.int32, logits.shape, 1)
        onehot = (classes == y).astype(jnp.float32)
        n = jnp.float32(logits.shape[0])
        loss = -jnp.sum(onehot * log_probs) / n
        # argmax (first index attaining the row max) -> correct count
        is_max = logits >= row_max
        idx = jnp.where(is_max, classes, jnp.int32(n_classes))
        pred = jnp.min(idx, axis=-1, keepdims=True)
        correct = jnp.sum((pred == y).astype(jnp.float32))
        return loss, correct

    def ce_grads(logits, y, x):
        _, _, e, denom = softmax_parts(logits)
        probs = e * pl.reciprocal(denom, approx=True)     # EUP slot, ~free
        classes = jax.lax.broadcasted_iota(jnp.int32, logits.shape, 1)
        onehot = (classes == y).astype(jnp.float32)
        n = jnp.float32(logits.shape[0])
        g = (probs - onehot) / n                          # (N, C)
        # dW = x^T @ g without materializing a transpose of x
        dw = jax.lax.dot_general(
            x, g, dimension_numbers=(((0,), (0,)), ((), ())),
            preferred_element_type=jnp.float32)           # (D, C)
        db = jnp.sum(g, axis=0, keepdims=True)            # (1, C)
        return dw, db

    def add_metric(row, loss_v, corr_v):
        # accumulate into the lane-dense per-task output slab (1, 8, 128)
        sub = jax.lax.broadcasted_iota(jnp.int32, loss_ref.shape, 1)
        sel = (sub == row).astype(jnp.float32)
        loss_ref[...] = loss_ref[...] + sel * loss_v
        corr_ref[...] = corr_ref[...] + sel * corr_v

    @pl.when(k == 0)
    def _init():
        fw_w_ref[...] = w0_ref[...]
        fw_b_ref[...] = b0_ref[...]
        loss_ref[...] = jnp.zeros_like(loss_ref)
        corr_ref[...] = jnp.zeros_like(corr_ref)
        # query eval with the original meta params (metrics row 0, eval-only:
        # no gradient matmul here)
        logits_q0 = forward_logits(xq, w0_ref[...], b0_ref[...])
        l0, c0 = loss_and_correct(logits_q0, yq)
        add_metric(0, l0, c0)

    # ---- one inner MAML step on the support set ----
    w_cur = fw_w_ref[...]
    b_cur = fw_b_ref[...]
    logits_s = forward_logits(xs, w_cur, b_cur)
    dw_s, db_s = ce_grads(logits_s, ys, xs)
    w_new = w_cur - jnp.float32(base_lr) * dw_s
    b_new = b_cur - jnp.float32(base_lr) * db_s
    fw_w_ref[...] = w_new
    fw_b_ref[...] = b_new

    # ---- query eval at the updated fast weights (metrics row k+1) ----
    logits_q = forward_logits(xq, w_new, b_new)
    l_q, c_q = loss_and_correct(logits_q, yq)
    add_metric(k + 1, l_q, c_q)

    @pl.when(k == last)
    def _meta_grad():
        # TODO(synk): the original backprops the final query loss through the
        # whole inner loop (second-order MAML); we use the first-order
        # approximation: gradient of the final query loss at the final fast
        # weights. Only computed on the last inner step (gated matmul).
        dw_q, db_q = ce_grads(logits_q, yq, xq)
        dwq_ref[0] = dw_q
        dbq_ref[0] = db_q


def _maml_inner(x_spt, y_spt, x_qry, y_qry, w0, b0, update_step, base_lr):
    """One pallas_call for the full inner loop over all tasks and steps.

    Returns (loss_per_step(6,), correct_per_step(6,), meta_dW, meta_db),
    where loss/correct are already summed over tasks and meta grads are the
    sum over tasks of the final-step query-loss gradients.
    """
    tasks, shot, d = x_spt.shape
    query = x_qry.shape[1]
    c = w0.shape[1]
    steps_pad = ((update_step + 1 + 7) // 8) * 8          # sublane-aligned slab

    ys3 = y_spt.reshape(tasks, shot, 1).astype(jnp.int32)
    yq3 = y_qry.reshape(tasks, query, 1).astype(jnp.int32)

    out_shape = (
        jax.ShapeDtypeStruct((tasks, steps_pad, 128), jnp.float32),  # loss slab
        jax.ShapeDtypeStruct((tasks, steps_pad, 128), jnp.float32),  # correct slab
        jax.ShapeDtypeStruct((tasks, d, c), jnp.float32),            # per-task dW
        jax.ShapeDtypeStruct((tasks, 1, c), jnp.float32),            # per-task db
    )

    in_specs = [
        pl.BlockSpec((1, shot, d), lambda i, k: (i, 0, 0)),   # x_spt[i]
        pl.BlockSpec((1, shot, 1), lambda i, k: (i, 0, 0)),   # y_spt[i]
        pl.BlockSpec((1, query, d), lambda i, k: (i, 0, 0)),  # x_qry[i]
        pl.BlockSpec((1, query, 1), lambda i, k: (i, 0, 0)),  # y_qry[i]
        pl.BlockSpec((d, c), lambda i, k: (0, 0)),            # meta W
        pl.BlockSpec((1, c), lambda i, k: (0, 0)),            # meta b
    ]
    out_specs = (
        pl.BlockSpec((1, steps_pad, 128), lambda i, k: (i, 0, 0)),
        pl.BlockSpec((1, steps_pad, 128), lambda i, k: (i, 0, 0)),
        pl.BlockSpec((1, d, c), lambda i, k: (i, 0, 0)),
        pl.BlockSpec((1, 1, c), lambda i, k: (i, 0, 0)),
    )

    loss_slab, corr_slab, dwq, dbq = pl.pallas_call(
        functools.partial(_maml_inner_kernel, base_lr=base_lr),
        out_shape=out_shape,
        grid=(tasks, update_step),
        in_specs=in_specs,
        out_specs=out_specs,
        scratch_shapes=[
            pltpu.VMEM((d, c), jnp.float32),   # fast weights W
            pltpu.VMEM((1, c), jnp.float32),   # fast weights b
        ],
        compiler_params=pltpu.CompilerParams(
            dimension_semantics=("parallel", "arbitrary")),
    )(x_spt, ys3, x_qry, yq3, w0, b0)

    loss_per_step = jnp.sum(loss_slab[:, :update_step + 1, 0], axis=0)
    corr_per_step = jnp.sum(corr_slab[:, :update_step + 1, 0], axis=0)
    meta_dw = jnp.sum(dwq, axis=0)
    meta_db = jnp.sum(dbq, axis=0)
    return loss_per_step, corr_per_step, meta_dw, meta_db


# ----------------------------------------------------------------------------
# Jitted meta step: kernel + metrics + Adam meta-update (single device program)
# ----------------------------------------------------------------------------
@functools.partial(jax.jit,
                   static_argnames=("update_step", "base_lr",
                                    "meta_lr", "weight_decay"))
def _meta_step(params, adam_m, adam_v, adam_t,
               x_spt, y_spt, x_qry, y_qry, *,
               update_step, base_lr, meta_lr, weight_decay):
    w0, b0 = params
    task_num = x_spt.shape[0]
    query_size = x_qry.shape[1]

    loss_steps, corr_steps, dw, db = _maml_inner(
        x_spt, y_spt, x_qry, y_qry, w0, b0, update_step, base_lr)

    accs = corr_steps / jnp.float32(query_size * task_num)
    losses = loss_steps / jnp.float32(task_num)

    # Adam meta-update (lr=meta_lr, weight_decay=1e-5), mirrors meta_optim.step
    t = adam_t + 1
    tf = t.astype(jnp.float32)
    beta1, beta2, eps = 0.9, 0.999, 1e-8
    grads = (dw / jnp.float32(task_num) + weight_decay * w0,
             db / jnp.float32(task_num) + weight_decay * b0)

    new_params, new_m, new_v = [], [], []
    for p, g, m, v in zip(params, grads, adam_m, adam_v):
        m = beta1 * m + (1.0 - beta1) * g
        v = beta2 * v + (1.0 - beta2) * (g * g)
        m_hat = m / (1.0 - beta1 ** tf)
        v_hat = v / (1.0 - beta2 ** tf)
        new_params.append(p - meta_lr * m_hat / (jnp.sqrt(v_hat) + eps))
        new_m.append(m)
        new_v.append(v)

    return (tuple(new_params), tuple(new_m), tuple(new_v), t, accs, losses)


# ----------------------------------------------------------------------------
# MetaLearner built on the fused kernel
# ----------------------------------------------------------------------------
class MetaLearner:
    def __init__(self, w, b):
        self.update_step = 5
        self.meta_lr = 1e-3
        self.base_lr = 1e-4
        self.weight_decay = 1e-5
        self.params = (w, b)
        self.adam_m = tuple(jnp.zeros_like(p) for p in self.params)
        self.adam_v = tuple(jnp.zeros_like(p) for p in self.params)
        self.adam_t = jnp.zeros((), jnp.int32)

    def forward(self, x_spt, x_spt_idx, y_spt, x_qry, x_qry_idx, y_qry):
        # TODO(synk): x_spt_idx / x_qry_idx are auxiliary inputs to the wrapped
        # `model`; the synthetic linear head ignores them.
        (new_params, new_m, new_v, new_t, accs, losses) = _meta_step(
            self.params, self.adam_m, self.adam_v, self.adam_t,
            x_spt, y_spt, x_qry, y_qry,
            update_step=self.update_step, base_lr=self.base_lr,
            meta_lr=self.meta_lr, weight_decay=self.weight_decay)
        self.params = new_params
        self.adam_m = new_m
        self.adam_v = new_v
        self.adam_t = new_t
        # single host sync at the very end of forward
        return np.asarray(accs), np.asarray(losses)


# ----------------------------------------------------------------------------
# main
# ----------------------------------------------------------------------------
if __name__ == "__main__":
    key = jax.random.PRNGKey(0)
    k1, k2, k3, k4, k5, _ = jax.random.split(key, 6)

    TASKS, SHOT, QUERY, D, C = 2, 8, 8, 32, 4

    x_spt = jax.random.normal(k1, (TASKS, SHOT, D), dtype=jnp.float32)
    x_qry = jax.random.normal(k2, (TASKS, QUERY, D), dtype=jnp.float32)
    y_spt = jax.random.randint(k3, (TASKS, SHOT), 0, C, dtype=jnp.int32)
    y_qry = jax.random.randint(k4, (TASKS, QUERY), 0, C, dtype=jnp.int32)
    x_spt_idx = jnp.arange(TASKS * SHOT, dtype=jnp.int32).reshape(TASKS, SHOT)
    x_qry_idx = jnp.arange(TASKS * QUERY, dtype=jnp.int32).reshape(TASKS, QUERY)

    # deterministic parameter init for the synthetic base learner
    w0 = jax.random.normal(k5, (D, C), dtype=jnp.float32) * 0.1
    b0 = jnp.zeros((1, C), dtype=jnp.float32)

    learner = MetaLearner(w0, b0)
    accs, loss = learner.forward(x_spt, x_spt_idx, y_spt, x_qry, x_qry_idx, y_qry)

    jax.block_until_ready(learner.params)

    assert accs.shape == (6,) and loss.shape == (6,)
    assert np.all(np.isfinite(loss)) and np.all((accs >= 0) & (accs <= 1))
    print("KERNEL_OK")
</pallas_src>

<mosaic_0001>
module attributes {stable_mosaic.version = 11 : i64} {
  func.func @_maml_inner_kernel(%arg0: i32, %arg1: i32, %arg2: memref<1x8x32xf32, #tpu.memory_space<vmem>>, %arg3: memref<1x8x1xi32, #tpu.memory_space<vmem>>, %arg4: memref<1x8x32xf32, #tpu.memory_space<vmem>>, %arg5: memref<1x8x1xi32, #tpu.memory_space<vmem>>, %arg6: memref<32x4xf32, #tpu.memory_space<vmem>>, %arg7: memref<1x4xf32, #tpu.memory_space<vmem>>, %arg8: memref<1x8x128xf32, #tpu.memory_space<vmem>>, %arg9: memref<1x8x128xf32, #tpu.memory_space<vmem>>, %arg10: memref<1x32x4xf32, #tpu.memory_space<vmem>>, %arg11: memref<1x1x4xf32, #tpu.memory_space<vmem>>, %arg12: memref<32x4xf32, #tpu.memory_space<vmem>>, %arg13: memref<1x4xf32, #tpu.memory_space<vmem>>) attributes {dimension_semantics = [#tpu.dimension_semantics<parallel>, #tpu.dimension_semantics<arbitrary>], iteration_bounds = array<i64: 2, 5>, scalar_prefetch = 0 : i64, scratch_operands = 2 : i64, tpu.core_type = #tpu.core_type<tc>, window_params = [{transform_indices = @transform_0, window_bounds = array<i64: 1, 8, 32>}, {transform_indices = @transform_1, window_bounds = array<i64: 1, 8, 1>}, {transform_indices = @transform_2, window_bounds = array<i64: 1, 8, 32>}, {transform_indices = @transform_3, window_bounds = array<i64: 1, 8, 1>}, {pipeline_mode = #tpu.pipeline_mode<synchronous>, transform_indices = @transform_4, window_bounds = array<i64: 32, 4>}, {pipeline_mode = #tpu.pipeline_mode<synchronous>, transform_indices = @transform_5, window_bounds = array<i64: 1, 4>}, {transform_indices = @transform_6, window_bounds = array<i64: 1, 8, 128>}, {transform_indices = @transform_7, window_bounds = array<i64: 1, 8, 128>}, {transform_indices = @transform_8, window_bounds = array<i64: 1, 32, 4>}, {transform_indices = @transform_9, window_bounds = array<i64: 1, 1, 4>}]} {
    %c0 = arith.constant 0 : index
    %c0_0 = arith.constant 0 : index
    %c0_1 = arith.constant 0 : index
    %0 = vector.load %arg2[%c0, %c0_0, %c0_1] : memref<1x8x32xf32, #tpu.memory_space<vmem>>, vector<1x8x32xf32>
    %1 = vector.shape_cast %0 : vector<1x8x32xf32> to vector<8x32xf32>
    %c0_2 = arith.constant 0 : index
    %c0_3 = arith.constant 0 : index
    %c0_4 = arith.constant 0 : index
    %2 = vector.load %arg3[%c0_2, %c0_3, %c0_4] : memref<1x8x1xi32, #tpu.memory_space<vmem>>, vector<1x8x1xi32>
    %3 = vector.shape_cast %2 : vector<1x8x1xi32> to vector<8x1xi32>
    %c0_5 = arith.constant 0 : index
    %c0_6 = arith.constant 0 : index
    %c0_7 = arith.constant 0 : index
    %4 = vector.load %arg4[%c0_5, %c0_6, %c0_7] : memref<1x8x32xf32, #tpu.memory_space<vmem>>, vector<1x8x32xf32>
    %5 = vector.shape_cast %4 : vector<1x8x32xf32> to vector<8x32xf32>
    %c0_8 = arith.constant 0 : index
    %c0_9 = arith.constant 0 : index
    %c0_10 = arith.constant 0 : index
    %6 = vector.load %arg5[%c0_8, %c0_9, %c0_10] : memref<1x8x1xi32, #tpu.memory_space<vmem>>, vector<1x8x1xi32>
    %7 = vector.shape_cast %6 : vector<1x8x1xi32> to vector<8x1xi32>
    %c0_i32 = arith.constant 0 : i32
    %8 = arith.cmpi eq, %arg1, %c0_i32 : i32
    %9 = arith.extui %8 : i1 to i32
    %c0_i32_11 = arith.constant 0 : i32
    %10 = arith.cmpi ne, %9, %c0_i32_11 : i32
    scf.if %10 {
      %c0_49 = arith.constant 0 : index
      %c0_50 = arith.constant 0 : index
      %102 = vector.load %arg6[%c0_49, %c0_50] : memref<32x4xf32, #tpu.memory_space<vmem>>, vector<32x4xf32>
      %c0_51 = arith.constant 0 : index
      %c0_52 = arith.constant 0 : index
      %103 = vector.load %arg12[%c0_51, %c0_52] : memref<32x4xf32, #tpu.memory_space<vmem>>, vector<32x4xf32>
      tpu.vector_store %arg12[%c0_51, %c0_52], %102 {strides = array<i32>} : memref<32x4xf32, #tpu.memory_space<vmem>>, vector<32x4xf32>,
      %c0_53 = arith.constant 0 : index
      %c0_54 = arith.constant 0 : index
      %104 = vector.load %arg7[%c0_53, %c0_54] : memref<1x4xf32, #tpu.memory_space<vmem>>, vector<1x4xf32>
      %c0_55 = arith.constant 0 : index
      %c0_56 = arith.constant 0 : index
      %105 = vector.load %arg13[%c0_55, %c0_56] : memref<1x4xf32, #tpu.memory_space<vmem>>, vector<1x4xf32>
      tpu.vector_store %arg13[%c0_55, %c0_56], %104 {strides = array<i32>} : memref<1x4xf32, #tpu.memory_space<vmem>>, vector<1x4xf32>,
      %cst_57 = arith.constant 0.000000e+00 : f32
      %106 = vector.broadcast %cst_57 : f32 to vector<1x8x128xf32>
      %c0_58 = arith.constant 0 : index
      %c0_59 = arith.constant 0 : index
      %c0_60 = arith.constant 0 : index
      %107 = vector.load %arg8[%c0_58, %c0_59, %c0_60] : memref<1x8x128xf32, #tpu.memory_space<vmem>>, vector<1x8x128xf32>
      tpu.vector_store %arg8[%c0_58, %c0_59, %c0_60], %106 {strides = array<i32>} : memref<1x8x128xf32, #tpu.memory_space<vmem>>, vector<1x8x128xf32>,
      %cst_61 = arith.constant 0.000000e+00 : f32
      %108 = vector.broadcast %cst_61 : f32 to vector<1x8x128xf32>
      %c0_62 = arith.constant 0 : index
      %c0_63 = arith.constant 0 : index
      %c0_64 = arith.constant 0 : index
      %109 = vector.load %arg9[%c0_62, %c0_63, %c0_64] : memref<1x8x128xf32, #tpu.memory_space<vmem>>, vector<1x8x128xf32>
      tpu.vector_store %arg9[%c0_62, %c0_63, %c0_64], %108 {strides = array<i32>} : memref<1x8x128xf32, #tpu.memory_space<vmem>>, vector<1x8x128xf32>,
      %c0_65 = arith.constant 0 : index
      %c0_66 = arith.constant 0 : index
      %110 = vector.load %arg6[%c0_65, %c0_66] : memref<32x4xf32, #tpu.memory_space<vmem>>, vector<32x4xf32>
      %c0_67 = arith.constant 0 : index
      %c0_68 = arith.constant 0 : index
      %111 = vector.load %arg7[%c0_67, %c0_68] : memref<1x4xf32, #tpu.memory_space<vmem>>, vector<1x4xf32>
      %cst_69 = arith.constant dense<0.000000e+00> : vector<8x4xf32>
      %112 = tpu.matmul %5, %110, %cst_69 {dimension_numbers = #tpu.dot_dimension_numbers<[1], [0], [0], [1], [0, 0, 1, 1], [], []>} : vector<8x32xf32>, vector<32x4xf32>, vector<8x4xf32> -> vector<8x4xf32>
      %113 = vector.broadcast %111 : vector<1x4xf32> to vector<8x4xf32>
      %114 = arith.addf %112, %113 : vector<8x4xf32>
      %cst_70 = arith.constant dense<0xFF800000> : vector<8xf32>
      %115 = vector.multi_reduction <maximumf>, %114, %cst_70 [1] : vector<8x4xf32> to vector<8xf32>
      %116 = vector.shape_cast %115 : vector<8xf32> to vector<8x1xf32>
      %117 = vector.broadcast %116 : vector<8x1xf32> to vector<8x4xf32>
      %118 = arith.subf %114, %117 : vector<8x4xf32>
      %119 = math.exp %118 : vector<8x4xf32>
      %cst_71 = arith.constant dense<0.000000e+00> : vector<8xf32>
      %120 = vector.multi_reduction <add>, %119, %cst_71 [1] : vector<8x4xf32> to vector<8xf32>
      %121 = vector.shape_cast %120 : vector<8xf32> to vector<8x1xf32>
      %122 = math.log %121 : vector<8x1xf32>
      %123 = vector.broadcast %122 : vector<8x1xf32> to vector<8x4xf32>
      %124 = arith.subf %118, %123 : vector<8x4xf32>
      %125 = tpu.iota {dimensions = array<i32: 1>} : vector<8x4xi32>
      %126 = vector.broadcast %7 : vector<8x1xi32> to vector<8x4xi32>
      %127 = arith.cmpi eq, %125, %126 : vector<8x4xi32>
      %128 = arith.extui %127 : vector<8x4xi1> to vector<8x4xi32>
      %129 = arith.sitofp %128 : vector<8x4xi32> to vector<8x4xf32>
      %130 = arith.mulf %129, %124 : vector<8x4xf32>
      %131 = vector.shape_cast %130 : vector<8x4xf32> to vector<1x8x4xf32>
      %cst_72 = arith.constant dense<0.000000e+00> : vector<1xf32>
      %132 = vector.multi_reduction <add>, %131, %cst_72 [1, 2] : vector<1x8x4xf32> to vector<1xf32>
      %133 = vector.shape_cast %132 : vector<1xf32> to vector<1x1x1xf32>
      %134 = vector.extract %133[0, 0, 0] : f32 from vector<1x1x1xf32>
      %cst_73 = arith.constant 0.000000e+00 : f32
      %135 = arith.subf %cst_73, %134 : f32
      %cst_74 = arith.constant 8.000000e+00 : f32
      %136 = arith.divf %135, %cst_74 : f32
      %137 = vector.broadcast %116 : vector<8x1xf32> to vector<8x4xf32>
      %138 = arith.cmpf oge, %114, %137 : vector<8x4xf32>
      %c4_i32_75 = arith.constant 4 : i32
      %139 = vector.broadcast %c4_i32_75 : i32 to vector<8x4xi32>
      %140 = arith.select %138, %125, %139 : vector<8x4xi1>, vector<8x4xi32>
      %cst_76 = arith.constant dense<2147483647> : vector<8xi32>
      %141 = vector.multi_reduction <minsi>, %140, %cst_76 [1] : vector<8x4xi32> to vector<8xi32>
      %142 = vector.shape_cast %141 : vector<8xi32> to vector<8x1xi32>
      %143 = arith.cmpi eq, %142, %7 : vector<8x1xi32>
      %144 = arith.extui %143 : vector<8x1xi1> to vector<8x1xi32>
      %145 = arith.sitofp %144 : vector<8x1xi32> to vector<8x1xf32>
      %146 = vector.shape_cast %145 : vector<8x1xf32> to vector<1x8x1xf32>
      %cst_77 = arith.constant dense<0.000000e+00> : vector<1xf32>
      %147 = vector.multi_reduction <add>, %146, %cst_77 [1, 2] : vector<1x8x1xf32> to vector<1xf32>
      %148 = vector.shape_cast %147 : vector<1xf32> to vector<1x1x1xf32>
      %149 = vector.extract %148[0, 0, 0] : f32 from vector<1x1x1xf32>
      %150 = tpu.iota {dimensions = array<i32: 1>} : vector<1x8x128xi32>
      %c0_i32_78 = arith.constant 0 : i32
      %151 = vector.broadcast %c0_i32_78 : i32 to vector<1x8x128xi32>
      %152 = arith.cmpi eq, %150, %151 : vector<1x8x128xi32>
      %153 = arith.extui %152 : vector<1x8x128xi1> to vector<1x8x128xi32>
      %154 = arith.sitofp %153 : vector<1x8x128xi32> to vector<1x8x128xf32>
      %c0_79 = arith.constant 0 : index
      %c0_80 = arith.constant 0 : index
      %c0_81 = arith.constant 0 : index
      %155 = vector.load %arg8[%c0_79, %c0_80, %c0_81] : memref<1x8x128xf32, #tpu.memory_space<vmem>>, vector<1x8x128xf32>
      %156 = vector.broadcast %136 : f32 to vector<1x8x128xf32>
      %157 = arith.mulf %154, %156 : vector<1x8x128xf32>
      %158 = arith.addf %155, %157 : vector<1x8x128xf32>
      %c0_82 = arith.constant 0 : index
      %c0_83 = arith.constant 0 : index
      %c0_84 = arith.constant 0 : index
      %159 = vector.load %arg8[%c0_82, %c0_83, %c0_84] : memref<1x8x128xf32, #tpu.memory_space<vmem>>, vector<1x8x128xf32>
      tpu.vector_store %arg8[%c0_82, %c0_83, %c0_84], %158 {strides = array<i32>} : memref<1x8x128xf32, #tpu.memory_space<vmem>>, vector<1x8x128xf32>,
      %c0_85 = arith.constant 0 : index
      %c0_86 = arith.constant 0 : index
      %c0_87 = arith.constant 0 : index
      %160 = vector.load %arg9[%c0_85, %c0_86, %c0_87] : memref<1x8x128xf32, #tpu.memory_space<vmem>>, vector<1x8x128xf32>
      %161 = vector.broadcast %149 : f32 to vector<1x8x128xf32>
      %162 = arith.mulf %154, %161 : vector<1x8x128xf32>
      %163 = arith.addf %160, %162 : vector<1x8x128xf32>
      %c0_88 = arith.constant 0 : index
      %c0_89 = arith.constant 0 : index
      %c0_90 = arith.constant 0 : index
      %164 = vector.load %arg9[%c0_88, %c0_89, %c0_90] : memref<1x8x128xf32, #tpu.memory_space<vmem>>, vector<1x8x128xf32>
      tpu.vector_store %arg9[%c0_88, %c0_89, %c0_90], %163 {strides = array<i32>} : memref<1x8x128xf32, #tpu.memory_space<vmem>>, vector<1x8x128xf32>,
    } else {
    }
    %c0_12 = arith.constant 0 : index
    %c0_13 = arith.constant 0 : index
    %11 = vector.load %arg12[%c0_12, %c0_13] : memref<32x4xf32, #tpu.memory_space<vmem>>, vector<32x4xf32>
    %c0_14 = arith.constant 0 : index
    %c0_15 = arith.constant 0 : index
    %12 = vector.load %arg13[%c0_14, %c0_15] : memref<1x4xf32, #tpu.memory_space<vmem>>, vector<1x4xf32>
    %cst = arith.constant dense<0.000000e+00> : vector<8x4xf32>
    %13 = tpu.matmul %1, %11, %cst {dimension_numbers = #tpu.dot_dimension_numbers<[1], [0], [0], [1], [0, 0, 1, 1], [], []>} : vector<8x32xf32>, vector<32x4xf32>, vector<8x4xf32> -> vector<8x4xf32>
    %14 = vector.broadcast %12 : vector<1x4xf32> to vector<8x4xf32>
    %15 = arith.addf %13, %14 : vector<8x4xf32>
    %cst_16 = arith.constant dense<0xFF800000> : vector<8xf32>
    %16 = vector.multi_reduction <maximumf>, %15, %cst_16 [1] : vector<8x4xf32> to vector<8xf32>
    %17 = vector.shape_cast %16 : vector<8xf32> to vector<8x1xf32>
    %18 = vector.broadcast %17 : vector<8x1xf32> to vector<8x4xf32>
    %19 = arith.subf %15, %18 : vector<8x4xf32>
    %20 = math.exp %19 : vector<8x4xf32>
    %cst_17 = arith.constant dense<0.000000e+00> : vector<8xf32>
    %21 = vector.multi_reduction <add>, %20, %cst_17 [1] : vector<8x4xf32> to vector<8xf32>
    %22 = vector.shape_cast %21 : vector<8xf32> to vector<8x1xf32>
    %23 = tpu.reciprocal %22 {approx = true} : vector<8x1xf32> -> vector<8x1xf32>
    %24 = vector.broadcast %23 : vector<8x1xf32> to vector<8x4xf32>
    %25 = arith.mulf %20, %24 : vector<8x4xf32>
    %26 = tpu.iota {dimensions = array<i32: 1>} : vector<8x4xi32>
    %27 = vector.broadcast %3 : vector<8x1xi32> to vector<8x4xi32>
    %28 = arith.cmpi eq, %26, %27 : vector<8x4xi32>
    %29 = arith.extui %28 : vector<8x4xi1> to vector<8x4xi32>
    %30 = arith.sitofp %29 : vector<8x4xi32> to vector<8x4xf32>
    %31 = arith.subf %25, %30 : vector<8x4xf32>
    %cst_18 = arith.constant 8.000000e+00 : f32
    %32 = vector.broadcast %cst_18 : f32 to vector<8x4xf32>
    %33 = arith.divf %31, %32 : vector<8x4xf32>
    %cst_19 = arith.constant dense<0.000000e+00> : vector<32x4xf32>
    %34 = tpu.matmul %1, %33, %cst_19 {dimension_numbers = #tpu.dot_dimension_numbers<[0], [0], [1], [1], [0, 1, 1, 1], [], []>} : vector<8x32xf32>, vector<8x4xf32>, vector<32x4xf32> -> vector<32x4xf32>
    %cst_20 = arith.constant dense<0.000000e+00> : vector<4xf32>
    %35 = vector.multi_reduction <add>, %33, %cst_20 [0] : vector<8x4xf32> to vector<4xf32>
    %36 = vector.shape_cast %35 : vector<4xf32> to vector<1x4xf32>
    %cst_21 = arith.constant 9.99999974E-5 : f32
    %37 = vector.broadcast %cst_21 : f32 to vector<32x4xf32>
    %38 = arith.mulf %37, %34 : vector<32x4xf32>
    %39 = arith.subf %11, %38 : vector<32x4xf32>
    %cst_22 = arith.constant 9.99999974E-5 : f32
    %40 = vector.broadcast %cst_22 : f32 to vector<1x4xf32>
    %41 = arith.mulf %40, %36 : vector<1x4xf32>
    %42 = arith.subf %12, %41 : vector<1x4xf32>
    %c0_23 = arith.constant 0 : index
    %c0_24 = arith.constant 0 : index
    %43 = vector.load %arg12[%c0_23, %c0_24] : memref<32x4xf32, #tpu.memory_space<vmem>>, vector<32x4xf32>
    tpu.vector_store %arg12[%c0_23, %c0_24], %39 {strides = array<i32>} : memref<32x4xf32, #tpu.memory_space<vmem>>, vector<32x4xf32>,
    %c0_25 = arith.constant 0 : index
    %c0_26 = arith.constant 0 : index
    %44 = vector.load %arg13[%c0_25, %c0_26] : memref<1x4xf32, #tpu.memory_space<vmem>>, vector<1x4xf32>
    tpu.vector_store %arg13[%c0_25, %c0_26], %42 {strides = array<i32>} : memref<1x4xf32, #tpu.memory_space<vmem>>, vector<1x4xf32>,
    %cst_27 = arith.constant dense<0.000000e+00> : vector<8x4xf32>
    %45 = tpu.matmul %5, %39, %cst_27 {dimension_numbers = #tpu.dot_dimension_numbers<[1], [0], [0], [1], [0, 0, 1, 1], [], []>} : vector<8x32xf32>, vector<32x4xf32>, vector<8x4xf32> -> vector<8x4xf32>
    %46 = vector.broadcast %42 : vector<1x4xf32> to vector<8x4xf32>
    %47 = arith.addf %45, %46 : vector<8x4xf32>
    %cst_28 = arith.constant dense<0xFF800000> : vector<8xf32>
    %48 = vector.multi_reduction <maximumf>, %47, %cst_28 [1] : vector<8x4xf32> to vector<8xf32>
    %49 = vector.shape_cast %48 : vector<8xf32> to vector<8x1xf32>
    %50 = vector.broadcast %49 : vector<8x1xf32> to vector<8x4xf32>
    %51 = arith.subf %47, %50 : vector<8x4xf32>
    %52 = math.exp %51 : vector<8x4xf32>
    %cst_29 = arith.constant dense<0.000000e+00> : vector<8xf32>
    %53 = vector.multi_reduction <add>, %52, %cst_29 [1] : vector<8x4xf32> to vector<8xf32>
    %54 = vector.shape_cast %53 : vector<8xf32> to vector<8x1xf32>
    %55 = math.log %54 : vector<8x1xf32>
    %56 = vector.broadcast %55 : vector<8x1xf32> to vector<8x4xf32>
    %57 = arith.subf %51, %56 : vector<8x4xf32>
    %58 = tpu.iota {dimensions = array<i32: 1>} : vector<8x4xi32>
    %59 = vector.broadcast %7 : vector<8x1xi32> to vector<8x4xi32>
    %60 = arith.cmpi eq, %58, %59 : vector<8x4xi32>
    %61 = arith.extui %60 : vector<8x4xi1> to vector<8x4xi32>
    %62 = arith.sitofp %61 : vector<8x4xi32> to vector<8x4xf32>
    %63 = arith.mulf %62, %57 : vector<8x4xf32>
    %64 = vector.shape_cast %63 : vector<8x4xf32> to vector<1x8x4xf32>
    %cst_30 = arith.constant dense<0.000000e+00> : vector<1xf32>
    %65 = vector.multi_reduction <add>, %64, %cst_30 [1, 2] : vector<1x8x4xf32> to vector<1xf32>
    %66 = vector.shape_cast %65 : vector<1xf32> to vector<1x1x1xf32>
    %67 = vector.extract %66[0, 0, 0] : f32 from vector<1x1x1xf32>
    %cst_31 = arith.constant 0.000000e+00 : f32
    %68 = arith.subf %cst_31, %67 : f32
    %cst_32 = arith.constant 8.000000e+00 : f32
    %69 = arith.divf %68, %cst_32 : f32
    %70 = vector.broadcast %49 : vector<8x1xf32> to vector<8x4xf32>
    %71 = arith.cmpf oge, %47, %70 : vector<8x4xf32>
    %c4_i32 = arith.constant 4 : i32
    %72 = vector.broadcast %c4_i32 : i32 to vector<8x4xi32>
    %73 = arith.select %71, %58, %72 : vector<8x4xi1>, vector<8x4xi32>
    %cst_33 = arith.constant dense<2147483647> : vector<8xi32>
    %74 = vector.multi_reduction <minsi>, %73, %cst_33 [1] : vector<8x4xi32> to vector<8xi32>
    %75 = vector.shape_cast %74 : vector<8xi32> to vector<8x1xi32>
    %76 = arith.cmpi eq, %75, %7 : vector<8x1xi32>
    %77 = arith.extui %76 : vector<8x1xi1> to vector<8x1xi32>
    %78 = arith.sitofp %77 : vector<8x1xi32> to vector<8x1xf32>
    %79 = vector.shape_cast %78 : vector<8x1xf32> to vector<1x8x1xf32>
    %cst_34 = arith.constant dense<0.000000e+00> : vector<1xf32>
    %80 = vector.multi_reduction <add>, %79, %cst_34 [1, 2] : vector<1x8x1xf32> to vector<1xf32>
    %81 = vector.shape_cast %80 : vector<1xf32> to vector<1x1x1xf32>
    %82 = vector.extract %81[0, 0, 0] : f32 from vector<1x1x1xf32>
    %c1_i32 = arith.constant 1 : i32
    %83 = arith.addi %arg1, %c1_i32 : i32
    %84 = tpu.iota {dimensions = array<i32: 1>} : vector<1x8x128xi32>
    %85 = vector.broadcast %83 : i32 to vector<1x8x128xi32>
    %86 = arith.cmpi eq, %84, %85 : vector<1x8x128xi32>
    %87 = arith.extui %86 : vector<1x8x128xi1> to vector<1x8x128xi32>
    %88 = arith.sitofp %87 : vector<1x8x128xi32> to vector<1x8x128xf32>
    %c0_35 = arith.constant 0 : index
    %c0_36 = arith.constant 0 : index
    %c0_37 = arith.constant 0 : index
    %89 = vector.load %arg8[%c0_35, %c0_36, %c0_37] : memref<1x8x128xf32, #tpu.memory_space<vmem>>, vector<1x8x128xf32>
    %90 = vector.broadcast %69 : f32 to vector<1x8x128xf32>
    %91 = arith.mulf %88, %90 : vector<1x8x128xf32>
    %92 = arith.addf %89, %91 : vector<1x8x128xf32>
    %c0_38 = arith.constant 0 : index
    %c0_39 = arith.constant 0 : index
    %c0_40 = arith.constant 0 : index
    %93 = vector.load %arg8[%c0_38, %c0_39, %c0_40] : memref<1x8x128xf32, #tpu.memory_space<vmem>>, vector<1x8x128xf32>
    tpu.vector_store %arg8[%c0_38, %c0_39, %c0_40], %92 {strides = array<i32>} : memref<1x8x128xf32, #tpu.memory_space<vmem>>, vector<1x8x128xf32>,
    %c0_41 = arith.constant 0 : index
    %c0_42 = arith.constant 0 : index
    %c0_43 = arith.constant 0 : index
    %94 = vector.load %arg9[%c0_41, %c0_42, %c0_43] : memref<1x8x128xf32, #tpu.memory_space<vmem>>, vector<1x8x128xf32>
    %95 = vector.broadcast %82 : f32 to vector<1x8x128xf32>
    %96 = arith.mulf %88, %95 : vector<1x8x128xf32>
    %97 = arith.addf %94, %96 : vector<1x8x128xf32>
    %c0_44 = arith.constant 0 : index
    %c0_45 = arith.constant 0 : index
    %c0_46 = arith.constant 0 : index
    %98 = vector.load %arg9[%c0_44, %c0_45, %c0_46] : memref<1x8x128xf32, #tpu.memory_space<vmem>>, vector<1x8x128xf32>
    tpu.vector_store %arg9[%c0_44, %c0_45, %c0_46], %97 {strides = array<i32>} : memref<1x8x128xf32, #tpu.memory_space<vmem>>, vector<1x8x128xf32>,
    %c4_i32_47 = arith.constant 4 : i32
    %99 = arith.cmpi eq, %arg1, %c4_i32_47 : i32
    %100 = arith.extui %99 : i1 to i32
    %c0_i32_48 = arith.constant 0 : i32
    %101 = arith.cmpi ne, %100, %c0_i32_48 : i32
    scf.if %101 {
      %cst_49 = arith.constant dense<0xFF800000> : vector<8xf32>
      %102 = vector.multi_reduction <maximumf>, %47, %cst_49 [1] : vector<8x4xf32> to vector<8xf32>
      %103 = vector.shape_cast %102 : vector<8xf32> to vector<8x1xf32>
      %104 = vector.broadcast %103 : vector<8x1xf32> to vector<8x4xf32>
      %105 = arith.subf %47, %104 : vector<8x4xf32>
      %106 = math.exp %105 : vector<8x4xf32>
      %cst_50 = arith.constant dense<0.000000e+00> : vector<8xf32>
      %107 = vector.multi_reduction <add>, %106, %cst_50 [1] : vector<8x4xf32> to vector<8xf32>
      %108 = vector.shape_cast %107 : vector<8xf32> to vector<8x1xf32>
      %109 = tpu.reciprocal %108 {approx = true} : vector<8x1xf32> -> vector<8x1xf32>
      %110 = vector.broadcast %109 : vector<8x1xf32> to vector<8x4xf32>
      %111 = arith.mulf %106, %110 : vector<8x4xf32>
      %112 = tpu.iota {dimensions = array<i32: 1>} : vector<8x4xi32>
      %113 = vector.broadcast %7 : vector<8x1xi32> to vector<8x4xi32>
      %114 = arith.cmpi eq, %112, %113 : vector<8x4xi32>
      %115 = arith.extui %114 : vector<8x4xi1> to vector<8x4xi32>
      %116 = arith.sitofp %115 : vector<8x4xi32> to vector<8x4xf32>
      %117 = arith.subf %111, %116 : vector<8x4xf32>
      %cst_51 = arith.constant 8.000000e+00 : f32
      %118 = vector.broadcast %cst_51 : f32 to vector<8x4xf32>
      %119 = arith.divf %117, %118 : vector<8x4xf32>
      %cst_52 = arith.constant dense<0.000000e+00> : vector<32x4xf32>
      %120 = tpu.matmul %5, %119, %cst_52 {dimension_numbers = #tpu.dot_dimension_numbers<[0], [0], [1], [1], [0, 1, 1, 1], [], []>} : vector<8x32xf32>, vector<8x4xf32>, vector<32x4xf32> -> vector<32x4xf32>
      %cst_53 = arith.constant dense<0.000000e+00> : vector<4xf32>
      %121 = vector.multi_reduction <add>, %119, %cst_53 [0] : vector<8x4xf32> to vector<4xf32>
      %122 = vector.shape_cast %121 : vector<4xf32> to vector<1x4xf32>
      %c0_54 = arith.constant 0 : index
      %c0_55 = arith.constant 0 : index
      %c0_56 = arith.constant 0 : index
      %123 = vector.load %arg10[%c0_54, %c0_55, %c0_56] : memref<1x32x4xf32, #tpu.memory_space<vmem>>, vector<1x32x4xf32>
      %124 = vector.shape_cast %123 : vector<1x32x4xf32> to vector<32x4xf32>
      %125 = vector.shape_cast %120 : vector<32x4xf32> to vector<1x32x4xf32>
      tpu.vector_store %arg10[%c0_54, %c0_55, %c0_56], %125 {strides = array<i32>} : memref<1x32x4xf32, #tpu.memory_space<vmem>>, vector<1x32x4xf32>,
      %c0_57 = arith.constant 0 : index
      %c0_58 = arith.constant 0 : index
      %c0_59 = arith.constant 0 : index
      %126 = vector.load %arg11[%c0_57, %c0_58, %c0_59] : memref<1x1x4xf32, #tpu.memory_space<vmem>>, vector<1x1x4xf32>
      %127 = vector.shape_cast %126 : vector<1x1x4xf32> to vector<1x4xf32>
      %128 = vector.shape_cast %122 : vector<1x4xf32> to vector<1x1x4xf32>
      tpu.vector_store %arg11[%c0_57, %c0_58, %c0_59], %128 {strides = array<i32>} : memref<1x1x4xf32, #tpu.memory_space<vmem>>, vector<1x1x4xf32>,
    } else {
    }
    return
  }
  func.func @transform_0(%arg0: i32, %arg1: i32) -> (i32, i32, i32) {
    %c0_i32 = arith.constant 0 : i32
    %c0_i32_0 = arith.constant 0 : i32
    %c0_i32_1 = arith.constant 0 : i32
    return %arg0, %c0_i32, %c0_i32_0 : i32, i32, i32
  }
  func.func @transform_1(%arg0: i32, %arg1: i32) -> (i32, i32, i32) {
    %c0_i32 = arith.constant 0 : i32
    %c0_i32_0 = arith.constant 0 : i32
    %c0_i32_1 = arith.constant 0 : i32
    return %arg0, %c0_i32, %c0_i32_0 : i32, i32, i32
  }
  func.func @transform_2(%arg0: i32, %arg1: i32) -> (i32, i32, i32) {
    %c0_i32 = arith.constant 0 : i32
    %c0_i32_0 = arith.constant 0 : i32
    %c0_i32_1 = arith.constant 0 : i32
    return %arg0, %c0_i32, %c0_i32_0 : i32, i32, i32
  }
  func.func @transform_3(%arg0: i32, %arg1: i32) -> (i32, i32, i32) {
    %c0_i32 = arith.constant 0 : i32
    %c0_i32_0 = arith.constant 0 : i32
    %c0_i32_1 = arith.constant 0 : i32
    return %arg0, %c0_i32, %c0_i32_0 : i32, i32, i32
  }
  func.func @transform_4(%arg0: i32, %arg1: i32) -> (i32, i32) {
    %c0_i32 = arith.constant 0 : i32
    %c0_i32_0 = arith.constant 0 : i32
    %c0_i32_1 = arith.constant 0 : i32
    return %c0_i32, %c0_i32_0 : i32, i32
  }
  func.func @transform_5(%arg0: i32, %arg1: i32) -> (i32, i32) {
    %c0_i32 = arith.constant 0 : i32
    %c0_i32_0 = arith.constant 0 : i32
    %c0_i32_1 = arith.constant 0 : i32
    return %c0_i32, %c0_i32_0 : i32, i32
  }
  func.func @transform_6(%arg0: i32, %arg1: i32) -> (i32, i32, i32) {
    %c0_i32 = arith.constant 0 : i32
    %c0_i32_0 = arith.constant 0 : i32
    %c0_i32_1 = arith.constant 0 : i32
    return %arg0, %c0_i32, %c0_i32_0 : i32, i32, i32
  }
  func.func @transform_7(%arg0: i32, %arg1: i32) -> (i32, i32, i32) {
    %c0_i32 = arith.constant 0 : i32
    %c0_i32_0 = arith.constant 0 : i32
    %c0_i32_1 = arith.constant 0 : i32
    return %arg0, %c0_i32, %c0_i32_0 : i32, i32, i32
  }
  func.func @transform_8(%arg0: i32, %arg1: i32) -> (i32, i32, i32) {
    %c0_i32 = arith.constant 0 : i32
    %c0_i32_0 = arith.constant 0 : i32
    %c0_i32_1 = arith.constant 0 : i32
    return %arg0, %c0_i32, %c0_i32_0 : i32, i32, i32
  }
  func.func @transform_9(%arg0: i32, %arg1: i32) -> (i32, i32, i32) {
    %c0_i32 = arith.constant 0 : i32
    %c0_i32_0 = arith.constant 0 : i32
    %c0_i32_1 = arith.constant 0 : i32
    return %arg0, %c0_i32, %c0_i32_0 : i32, i32, i32
  }
}

</mosaic_0001>

<bundles_post_ra>
// kernel: _meta_step.1
= control target key start
LH: loop header
LB: loop body
LE: loop exit
PB: predicated region body
PF: predicated region fallthrough
CT: control target
= control target key end

     0   :  { %s1672_s30 = smov 0   ;;  %s1674_s10 = smov 0   ;;  %s1893_s0 = inlined_call_operand.vmem [shape: f32[2,8,32], index: 0, kind: input, shape index: {}]   ;;  %s1894_s1 = inlined_call_operand.vmem [shape: s32[2,8,1], index: 1, kind: input, shape index: {}]   ;;  %s1895_s2 = inlined_call_operand.vmem [shape: f32[2,8,32], index: 2, kind: input, shape index: {}]   ;;  %s1896_s3 = inlined_call_operand.vmem [shape: s32[2,8,1], index: 3, kind: input, shape index: {}]   ;;  %s1897_s4 = inlined_call_operand.vmem [shape: f32[32,4], index: 4, kind: input, shape index: {}]   ;;  %s1898_s5 = inlined_call_operand.vmem [shape: f32[1,4], index: 5, kind: input, shape index: {}]   ;;  %s1899_s6 = inlined_call_operand.vmem [shape: f32[2,8,128], index: 6, kind: output, shape index: {0}]   ;;  %s1900_s7 = inlined_call_operand.vmem [shape: f32[2,8,128], index: 7, kind: output, shape index: {1}]   ;;  %s1901_s8 = inlined_call_operand.vmem [shape: f32[2,32,4], index: 8, kind: output, shape index: {2}]   ;;  %s1902_s9 = inlined_call_operand.vmem [shape: f32[2,1,4], index: 9, kind: output, shape index: {3}]  }
   0x1   :  { %s1676_s11 = smov 0   ;;  %s1678_s12 = smov 0  }
   0x2   :  { %s1680_s13 = smov 0  }
   0x3 LB: > { %s29_s14 = sadd.s32 1, %s1604_s11  ;;  %s32_s15 = sadd.s32 1, %s1608_s12  ;;  %s1612_s13 = sphi %s1680_s13, %s20_s13   ;;  %s1608_s12 = sphi %s1678_s12, %s1910_s12   ;;  %s1604_s11 = sphi %s1676_s11, %s1909_s11   ;;  %s1600_s10 = sphi %s1674_s10, %s1908_s10   ;;  %s1596_s30 = sphi %s1672_s30, %s1907_s30  }
   0x4   : > { %p30_p0 = scmp.ge.s32.totalorder %s29_s14, 5  ;;  %p1373_p1 = scmp.ge.s32.totalorder %s1612_s13, 1 }
   0x5   : > { %p332_p2 = scmp.lt.s32.totalorder %s1612_s13, 11 }
   0x6   : > { %s1912_s14 = smov (%p30_p0, %s29_s14), 0  ;;  %s1914_s15 = smov (!%p30_p0, %s32_s15), %s1608_s12 }
   0x7   : > { %1903 = sst [smem:[#allocation4_spill]] %s1912_s14  ;;  %p333_p3 = pnand %p1373_p1, %p332_p2 }
   0x8   : > { %p34_p4 = scmp.ge.s32.totalorder %s1914_s15, 2  ;;  %p390_p5 = scmp.lt.s32.totalorder (!%p333_p3), %s1600_s10, 1 }
   0x9   : > { %336 = sbr.rel (%p333_p3) target bundleno = 2725 (0xaa5), region = 44  ;;  %p1382_p6 = scmp.ne.s32.totalorder (!%p333_p3), %s1596_s30, 0 }
   0xa   : > { %s1916_s15 = smov (%p34_p4, %s1914_s15), 0 }
   0xb   : > { %1904 = sst [smem:[#allocation5_spill]] %s1916_s15 }
  0x10   : > { %s1918_s10 = smov (!%p390_p5, %s1600_s10), 1  ;;  %429 = sbr.rel (%p1382_p6) target bundleno = 893 (0x37d), region = 48 }
  0x11   : > { %s1374_s16 = sshll.u32 %s1918_s10, 3  ;;  %s1405_s17 = sshll.u32 %s1918_s10, 5  ;;  %v439_v4 = vld [vmem:[%s1898_s5] sm:$0x1] (!%p1382_p6)  ;;  %vm440_vm0 = vcmask (!%p1382_p6), 24576   ;;  %v445_v6 = vld [vmem:[%s1897_s4 + $0x8] sm:$0xff] (!%p1382_p6)  ;;  %v541_v19 = vlaneseq (!%p1382_p6) }
  0x12   : > { %s393_s20 = scalar_lea.vmem %s1893_s0, %s1374_s16  ;;  %s397_s23 = scalar_lea.vmem %s1894_s1, %s1374_s16  ;;  %v444_v5 = vld [vmem:[%s1897_s4] sm:$0xff] (!%p1382_p6)  ;;  %441 = vst.msk [vmem:[#allocation3] sm:$0x1] (!%p1382_p6), %vm440_vm0, %v439_v4  ;;  %v1614_v7 = vmov (!%p1382_p6), 0.0|0.0   ;;  %v446_v9 = vld [vmem:[%s1897_s4 + $0x10] sm:$0xff] (!%p1382_p6)  ;;  %v447_v10 = vld [vmem:[%s1897_s4 + $0x18] sm:$0xff] (!%p1382_p6) }
  0x13   : > { %s401_s26 = scalar_lea.vmem %s1895_s2, %s1374_s16  ;;  %s405_s29 = scalar_lea.vmem %s1896_s3, %s1374_s16  ;;  %v1720_v0 = vld [vmem:[%s393_s20] sm:$0xff]  ;;  %1480 = vmatprep.subr.bf16.mxu0 (!%p1382_p6), %v1614_v7  ;;  %v1481_v8 = vpack.c.bf16 (!%p1382_p6), %v445_v6, %v444_v5  ;;  %vm1615_vm1 = vmmov (!%p1382_p6), 0   ;;  %v1616_v11 = vmov (!%p1382_p6), 0.0   ;;  %v1484_v12 = vpack.c.bf16 (!%p1382_p6), %v447_v10, %v446_v9 }
  0x14   : > { %v1722_v1 = vld [vmem:[%s397_s23] sm:$0xff]  ;;  %s1727_s18 = scalar_lea.vmem %s1899_s6, %s1374_s16  ;;  %s1732_s22 = scalar_lea.vmem %s1900_s7, %s1374_s16  ;;  %1439 = vmatprep.mubr.msk.f32.mxu0 (!%p1382_p6), %vm1615_vm1, %v1616_v11  ;;  %vm455_vm2 = vcmask (!%p1382_p6), 261120   ;;  %vm434_vm3 = vcmask (!%p1382_p6), 31744   ;;  %v1617_v18 = vmov (!%p1382_p6), 0   ;;  %v542_v20 = vand.u32 (!%p1382_p6), 127, %v541_v19 }
  0x15   : > { %v1734_v2 = vld [vmem:[%s401_s26] sm:$0xff]  ;;  %s1741_s20 = scalar_lea.vmem %s1901_s8, %s1405_s17  ;;  %s421_s14 = scalar_lea.vmem %s1902_s9, %s1918_s10  ;;  %1482 = vmatpush3.bf16.msra.mxu0 (!%p1382_p6), %v1481_v8  ;;  %435 = vst.msk [vmem:[#allocation2] sm:$0xff] (!%p1382_p6), %vm434_vm3, %v444_v5  ;;  %436 = vst.msk [vmem:[#allocation2 + $0x8] sm:$0xff] (!%p1382_p6), %vm434_vm3, %v445_v6  ;;  %1557 = vset.pattern.permute.xlu0 (!%p1382_p6), %v1617_v18  ;;  %vm584_vm7 = vcmask (!%p1382_p6), 7168   ;;  %v596_v56 = vshrl.u32 (!%p1382_p6), %v541_v19, 7 }
  0x16   : > { %v1736_v3 = vld [vmem:[%s405_s29] sm:$0xff]  ;;  %1483 = vmatprep.subr.bf16.mxu0 (!%p1382_p6), %v1614_v7  ;;  %437 = vst.msk [vmem:[#allocation2 + $0x10] sm:$0xff] (!%p1382_p6), %vm434_vm3, %v446_v9  ;;  %438 = vst.msk [vmem:[#allocation2 + $0x18] sm:$0xff] (!%p1382_p6), %vm434_vm3, %v447_v10 }
  0x17   : > { %v1383_v13 = vld [vmem:[%s1898_s5] ss:$0 sm:$0xff]  ;;  %vm597_vm9 = vcmp.eq.s32.totalorder %v596_v56, 0 }
  0x18   : > { %v1387_v57 = vsel %vm597_vm9, 1.0, %v1616_v11 }
  0x19   : > { %1485 = vmatpush3.bf16.msra.mxu0 %v1484_v12 }
  0x1c   : > { %1440 = vmatmul.mubr.msk.f32.vlgmr.msra.gmra.mrb[0].mxu0 %vm455_vm2, %v1734_v2 }
  0xef   : > { %v525_v14 = vpop.f32.mrb[0].mxu0 }
  0xf0   : > { %v526_v15 = vadd.f32 %v1383_v13, %v525_v14  ;;  %v1441_v16 = vpop.f32.mrb[1].mxu0 }
  0xf2   : > { %v529_v17 = vsel %vm434_vm3, %v526_v15, -inf }
  0xf3   : > { %530 = vmax.xlane.f32.xlu0 %v529_v17 }
 0x180   : > { %v531_v21 = vpop.xlane.xlu0 %530 }
 0x181   : > { %v532_v22 = vsub.f32 %v526_v15, %v531_v21  ;;  %vm564_vm4 = vcmp.ge.f32.partialorder %v526_v15, %v531_v21 }
 0x182   : > { %v565_v23 = vsel %vm564_vm4, %v542_v20, 4 }
 0x183   : > { %v533_v24 = vmul.f32 1.442695, %v532_v22  ;;  %v566_v25 = vsel %vm434_vm3, %v565_v23, 2147483647 }
 0x184   : > { %v568_v26 = vshra.s32 %v566_v25, 16  ;;  %v567_v30 = vand.u32 65535, %v566_v25 }
 0x185   : > { %1558 = vpow2.f32 %v533_v24 }
 0x186   : > { %v570_v27 = vcvt.s32.f32 %v568_v26  ;;  %v569_v32 = vcvt.s32.f32 %v567_v30 }
 0x188   : > { %571 = vmin.xlane.f32.xlu0 %v570_v27 }
 0x18f   : > { %v1559_v28 = vpop.eup %1558 }
 0x190   : > { %v535_v29 = vsel %vm434_vm3, %v1559_v28, 0.0 }
 0x191   : > { %536 = vadd.xlane.f32.xlu1 %v535_v29 }
 0x19e   : > { %544 = vperm.xlu0 %1557, %v1736_v3  }
 0x215   : > { %v572_v31 = vpop.xlane.xlu0 %571 }
 0x216   : > { %vm573_vm5 = vcmp.eq.f32.partialorder %v570_v27, %v572_v31  ;;  %v578_v42 = vcvt.f32.s32 %v572_v31 }
 0x217   : > { %v574_v33 = vsel %vm573_vm5, %v569_v32, inf }
 0x218   : > { %575 = vmin.xlane.f32.xlu1 %v574_v33  ;;  %v579_v44 = vshll.u32 %v578_v42, 16 }
 0x21d   : > { %v545_v35 = vpop.permute.xlu0 %544 }
 0x21e   : > { %v537_v34 = vpop.xlane.xlu1 %536  ;;  %vm546_vm6 = vcmp.eq.s32.totalorder %v542_v20, %v545_v35 }
 0x21f   : > { %1560 = vlog2.f32 %v537_v34  ;;  %v1385_v38 = vsel %vm546_vm6, 1.0, %v1616_v11 }
 0x229   : > { %v1561_v36 = vpop.eup %1560 }
 0x22a   : > { %v539_v37 = vmul.f32 0.6931472, %v1561_v36 }
 0x22c   : > { %v540_v39 = vsub.f32 %v532_v22, %v539_v37 }
 0x22e   : > { %v549_v40 = vmul.f32 %v1385_v38, %v540_v39 }
 0x230   : > { %v550_v41 = vsel %vm434_vm3, %v549_v40, 0.0 }
 0x231   : > { %551 = vadd.xlane.f32.xlu1 %v550_v41 }
 0x2a5   : > { %v576_v43 = vpop.xlane.xlu1 %575 }
 0x2a6   : > { %v577_v45 = vcvt.f32.s32 %v576_v43 }
 0x2a8   : > { %v580_v46 = vadd.s32 %v579_v44, %v577_v45 }
 0x2aa   : > { %vm581_vm8 = vcmp.eq.s32.totalorder %v580_v46, %v1736_v3 }
 0x2ab   : > { %v1386_v47 = vsel %vm581_vm8, 1.0, %v1616_v11 }
 0x2ac   : > { %v585_v48 = vsel %vm584_vm7, %v1386_v47, 0.0 }
 0x2ad   : > { %586 = vadd.xlane.f32.xlu1 %v585_v48 }
 0x2be   : > { %v552_v49 = vpop.xlane.xlu1 %551 }
 0x2bf   : > { %v553_v50 = vrot.slane %v552_v49, 4 }
 0x2c1   : > { %v554_v51 = vadd.f32 %v553_v50, %v552_v49 }
 0x2c3   : > { %v555_v52 = vrot.slane %v554_v51, 2 }
 0x2c5   : > { %v556_v53 = vadd.f32 %v555_v52, %v554_v51 }
 0x2c7   : > { %v557_v54 = vrot.slane %v556_v53, 1 }
 0x2c9   : > { %v558_v55 = vadd.f32 %v557_v54, %v556_v53 }
 0x2cb   : > { %1500 = vpush %v558_v55 }
 0x2fc   : > { %s1501_s15 = spop %1500 }
 0x2fd   : > { %s560_s28 = ssub.f32 0.0, %s1501_s15 }
 0x2ff   : > { %s563_s16 = smul.f32 0.125, %s560_s28 }
 0x301   : > { %v601_v58 = vstv %s563_s16 }
 0x302   : > { %v602_v59 = vmul.f32 %v1387_v57, %v601_v58 }
 0x304   : > { %604 = vst [vmem:[%s1727_s18] sm:$0xff] %v602_v59 }
 0x33a   : > { %v587_v60 = vpop.xlane.xlu1 %586 }
 0x33b   : > { %v588_v61 = vrot.slane %v587_v60, 4 }
 0x33d   : > { %v589_v62 = vadd.f32 %v588_v61, %v587_v60 }
 0x33f   : > { %v590_v63 = vrot.slane %v589_v62, 2 }
 0x341   : > { %v591_v4 = vadd.f32 %v590_v63, %v589_v62 }
 0x343   : > { %v592_v5 = vrot.slane %v591_v4, 1 }
 0x345   : > { %v593_v6 = vadd.f32 %v592_v5, %v591_v4 }
 0x347   : > { %1502 = vpush %v593_v6 }
 0x378   : > { %s1503_s26 = spop %1502 }
 0x379   : > { %v606_v7 = vstv %s1503_s26 }
 0x37a   : > { %v607_v8 = vmul.f32 %v1387_v57, %v606_v7 }
 0x37c   : > { %609 = vst [vmem:[%s1732_s22] sm:$0xff] %v607_v8 }
 0x37d PF: > { %v1618_v12 = vmov 0.0|0.0   ;;  %vm1619_vm10 = vmmov 0   ;;  %v1620_v15 = vmov 0.0   ;;  %vm621_vm11 = vcmask 261120   ;;  %s1014_s29 = sadd.s32 1, %s1596_s30  ;;  %p1398_p7 = scmp.ne.s32.totalorder %s1596_s30, 4 }
 0x37e   : > { %1486 = vmatprep.subr.bf16.mxu0 %v1618_v12  ;;  %1450 = vmatprep.mubr.msk.f32.mxu0 %vm1619_vm10, %v1620_v15  ;;  %v1621_v17 = vmov 0   ;;  %v616_v18 = vlaneseq  ;;  %vm695_vm12 = vcmask 31744   ;;  %vm750_vm13 = vcmask 64512  }
 0x37f   : > { %1562 = vset.pattern.permute.xlu1 %v1621_v17  ;;  %1563 = vset.pattern.permute.xlu0 %v1621_v17  ;;  %v614_v21 = vld [vmem:[#allocation3] sm:$0x1]  ;;  %vm869_vm15 = vcmask 24576   ;;  %vm1003_vm2 = vcmask 7168  }
 0x380   : > { %710 = vperm.xlu1 %1562, %v1722_v1   ;;  %v1803_v19 = vshrl.u32 %v616_v18, 7  ;;  %v1811_v33 = vand.u32 127, %v616_v18 }
 0x382   : > { %v1783_v9 = vld [vmem:[#allocation2] sm:$0xff]  ;;  %v1785_v10 = vld [vmem:[#allocation2 + $0x8] sm:$0xff]  ;;  %v618_v20 = vsub.s32 0, %v1803_v19 }
 0x383   : > { %v1787_v11 = vld [vmem:[#allocation2 + $0x10] sm:$0xff]  ;;  %v1487_v13 = vpack.c.bf16 %v1785_v10, %v1783_v9  ;;  %v1792_v14 = vld [vmem:[#allocation2 + $0x18] sm:$0xff] }
 0x384   : > { %v1490_v16 = vpack.c.bf16 %v1792_v14, %v1787_v11  ;;  %v619_v22 = vrot.slane %v614_v21, %v618_v20 }
 0x385   : > { %1488 = vmatpush3.bf16.msra.mxu0 %v1487_v13 }
 0x386   : > { %1489 = vmatprep.subr.bf16.mxu0 %v1618_v12 }
 0x389   : > { %1491 = vmatpush3.bf16.msra.mxu0 %v1490_v16 }
 0x38c   : > { %1451 = vmatmul.mubr.msk.f32.vlgmr.msra.gmra.mrb[0].mxu0 %vm621_vm11, %v1720_v0 }
 0x3a9   : > { %718 = vxpose.xlu1.b32.start.end [1/1] (short) (narrow) %v1720_v0, 32 }
 0x3ff   : > { %v711_v30 = vpop.permute.xlu1 %710 }
 0x400   : > { %vm712_vm14 = vcmp.eq.s32.totalorder %v1811_v33, %v711_v30 }
 0x401   : > { %v1389_v37 = vsel %vm712_vm14, 1.0, %v1620_v15 }
 0x429   : > { %v734_v31 = vpop.trf.xlu1 }
 0x42a   : > { %1455 = vmatprep.mubr.msk.f32.mxu1 %vm750_vm13, %v734_v31 }
 0x42d   : > { %v735_v34 = vpop.trf.xlu1 }
 0x431   : > { %v736_v39 = vpop.trf.xlu1 }
 0x435   : > { %v737_v44 = vpop.trf.xlu1 }
 0x45f   : > { %v691_v23 = vpop.f32.mrb[0].mxu0 }
 0x460   : > { %v692_v24 = vadd.f32 %v691_v23, %v619_v22  ;;  %v1452_v25 = vpop.f32.mrb[1].mxu0 }
 0x462   : > { %v696_v26 = vsel %vm695_vm12, %v692_v24, -inf }
 0x463   : > { %697 = vmax.xlane.f32.xlu0 %v696_v26 }
 0x4f0   : > { %v698_v27 = vpop.xlane.xlu0 %697 }
 0x4f1   : > { %v699_v1 = vsub.f32 %v692_v24, %v698_v27 }
 0x4f3   : > { %v700_v28 = vmul.f32 1.442695, %v699_v1 }
 0x4f5   : > { %1564 = vpow2.f32 %v700_v28 }
 0x4ff   : > { %v1565_v0 = vpop.eup %1564 }
 0x500   : > { %v702_v29 = vsel %vm695_vm12, %v1565_v0, 0.0 }
 0x501   : > { %703 = vadd.xlane.f32.xlu0 %v702_v29 }
 0x58e   : > { %v704_v32 = vpop.xlane.xlu0 %703 }
 0x58f   : > { %1566 = vrcp.f32 %v704_v32 }
 0x599   : > { %v1567_v35 = vpop.eup %1566 }
 0x59a   : > { %v706_v36 = vmul.f32 %v1567_v35, %v1565_v0 }
 0x59c   : > { %v715_v38 = vsub.f32 %v706_v36, %v1389_v37 }
 0x59e   : > { %v717_v40 = vmul.f32 0.125, %v715_v38 }
 0x5a0   : > { %1453 = vmatprep.subr.mxu1 %v717_v40  ;;  %v848_v41 = vsel %vm695_vm12, %v717_v40, 0.0 }
 0x5a1   : > { %v849_v42 = vrot.slane %v848_v41, 4  ;;  %1454 = vmatpush3.msra.mxu1 %v717_v40 }
 0x5a2   : > { %1456 = vmatmul.mubr.msk.f32.vlgmr.msra.gmra.mrb[0].mxu1 %vm750_vm13, %v735_v34  ;;  %1492 = vmatprep.subr.bf16.mxu1 %v1618_v12 }
 0x5a3   : > { %v850_v43 = vadd.f32 %v849_v42, %v848_v41  ;;  %1458 = vmatprep.mubr.msk.f32.mxu1 %vm750_vm13, %v736_v39 }
 0x5a5   : > { %v851_v45 = vrot.slane %v850_v43, 2 }
 0x5a6   : > { %1459 = vmatmul.mubr.msk.f32.gmra.mrb[2].mxu1 %vm750_vm13, %v737_v44 }
 0x5a7   : > { %1469 = vmatprep.mubr.msk.f32.mxu1 %vm1619_vm10, %v1620_v15  ;;  %v852_v46 = vadd.f32 %v851_v45, %v850_v43 }
 0x5a9   : > { %v853_v47 = vrot.slane %v852_v46, 1 }
 0x5ab   : > { %v854_v48 = vadd.f32 %v853_v47, %v852_v46 }
 0x5ad   : > { %v863_v49 = vmul.f32 0.0001, %v854_v48 }
 0x5af   : > { %v864_v50 = vsub.f32 %v614_v21, %v863_v49 }
 0x5b1   : > { %870 = vst.msk [vmem:[#allocation3] sm:$0x1] %vm869_vm15, %v864_v50  ;;  %v875_v5 = vrot.slane %v864_v50, %v618_v20 }
 0x675   : > { %v1457_v51 = vpop.f32.mrb[0].mxu1 }
 0x676   : > { %v856_v52 = vmul.f32 0.0001, %v1457_v51  ;;  %v829_v53 = vpop.f32.mrb[1].mxu1  ;;  %v1017_v51 = vstv %s1014_s29 }
 0x677   : > { %v855_v54 = vmul.f32 0.0001, %v829_v53  ;;  %vm1018_vm5 = vcmp.eq.s32.totalorder %v1803_v19, %v1017_v51  ;;  %v1026_v53 = vld [vmem:[%s1732_s22] sm:$0xff] }
 0x678   : > { %v860_v55 = vsub.f32 %v1785_v10, %v856_v52  ;;  %v1397_v52 = vsel %vm1018_vm5, 1.0, %v1620_v15 }
 0x679   : > { %v859_v56 = vsub.f32 %v1783_v9, %v855_v54  ;;  %v1460_v57 = vpop.f32.mrb[2].mxu1 }
 0x67a   : > { %866 = vst.msk [vmem:[#allocation2 + $0x8] sm:$0xff] %vm695_vm12, %v860_v55  ;;  %v858_v58 = vmul.f32 0.0001, %v1460_v57  ;;  %v839_v59 = vpop.f32.mrb[3].mxu1  ;;  %v1021_v57 = vld [vmem:[%s1727_s18] sm:$0xff] }
 0x67b   : > { %865 = vst.msk [vmem:[#allocation2] sm:$0xff] %vm695_vm12, %v859_v56  ;;  %v1493_v60 = vpack.c.bf16 %v860_v55, %v859_v56  ;;  %v857_v61 = vmul.f32 0.0001, %v839_v59 }
 0x67c   : > { %v862_v62 = vsub.f32 %v1792_v14, %v858_v58 }
 0x67d   : > { %v861_v63 = vsub.f32 %v1787_v11, %v857_v61  ;;  %1494 = vmatpush3.bf16.msra.mxu1 %v1493_v60 }
 0x67e   : > { %868 = vst.msk [vmem:[#allocation2 + $0x18] sm:$0xff] %vm695_vm12, %v862_v62  ;;  %1495 = vmatprep.subr.bf16.mxu1 %v1618_v12 }
 0x67f   : > { %867 = vst.msk [vmem:[#allocation2 + $0x10] sm:$0xff] %vm695_vm12, %v861_v63  ;;  %v1496_v4 = vpack.c.bf16 %v862_v62, %v861_v63 }
 0x681   : > { %1497 = vmatpush3.bf16.msra.mxu1 %v1496_v4 }
 0x684   : > { %1470 = vmatmul.mubr.msk.f32.vlgmr.msra.gmra.mrb[4].mxu1 %vm621_vm11, %v1734_v2 }
 0x757   : > { %v946_v6 = vpop.f32.mrb[4].mxu1 }
 0x758   : > { %v947_v7 = vadd.f32 %v946_v6, %v875_v5  ;;  %v1471_v8 = vpop.f32.mrb[5].mxu1 }
 0x75a   : > { %v950_v9 = vsel %vm695_vm12, %v947_v7, -inf }
 0x75b   : > { %951 = vmax.xlane.f32.xlu0 %v950_v9 }
 0x7e8   : > { %v952_v10 = vpop.xlane.xlu0 %951 }
 0x7e9   : > { %v953_v11 = vsub.f32 %v947_v7, %v952_v10  ;;  %vm983_vm0 = vcmp.ge.f32.partialorder %v947_v7, %v952_v10 }
 0x7ea   : > { %v984_v12 = vsel %vm983_vm0, %v1811_v33, 4 }
 0x7eb   : > { %v954_v13 = vmul.f32 1.442695, %v953_v11  ;;  %v985_v14 = vsel %vm695_vm12, %v984_v12, 2147483647 }
 0x7ec   : > { %v987_v16 = vshra.s32 %v985_v14, 16  ;;  %v986_v21 = vand.u32 65535, %v985_v14 }
 0x7ed   : > { %1568 = vpow2.f32 %v954_v13 }
 0x7ee   : > { %v989_v17 = vcvt.s32.f32 %v987_v16  ;;  %v988_v23 = vcvt.s32.f32 %v986_v21 }
 0x7f0   : > { %990 = vmin.xlane.f32.xlu0 %v989_v17 }
 0x7f7   : > { %v1839_v18 = vpop.eup %1568 }
 0x7f8   : > { %v956_v20 = vsel %vm695_vm12, %v1839_v18, 0.0 }
 0x7f9   : > { %957 = vadd.xlane.f32.xlu0 %v956_v20 }
 0x87d   : > { %v991_v22 = vpop.xlane.xlu0 %990 }
 0x87e   : > { %vm992_vm1 = vcmp.eq.f32.partialorder %v989_v17, %v991_v22  ;;  %v997_v26 = vcvt.f32.s32 %v991_v22 }
 0x87f   : > { %v993_v24 = vsel %vm992_vm1, %v988_v23, inf }
 0x880   : > { %994 = vmin.xlane.f32.xlu0 %v993_v24  ;;  %v998_v1 = vshll.u32 %v997_v26, 16 }
 0x886   : > { %v958_v25 = vpop.xlane.xlu0 %957 }
 0x887   : > { %1570 = vlog2.f32 %v958_v25 }
 0x888   : > { %1572 = vrcp.f32 (!%p1398_p7), %v958_v25 }
 0x891   : > { %v1571_v0 = vpop.eup %1570 }
 0x892   : > { %v960_v30 = vmul.f32 0.6931472, %v1571_v0 }
 0x894   : > { %v961_v35 = vsub.f32 %v953_v11, %v960_v30 }
 0x896   : > { %963 = vperm.xlu0 %1563, %v1736_v3  }
 0x90d   : > { %v995_v27 = vpop.xlane.xlu0 %994 }
 0x90e   : > { %v996_v28 = vcvt.f32.s32 %v995_v27 }
 0x910   : > { %v999_v29 = vadd.s32 %v998_v1, %v996_v28 }
 0x912   : > { %vm1000_vm3 = vcmp.eq.s32.totalorder %v999_v29, %v1736_v3 }
 0x913   : > { %v1396_v31 = vsel %vm1000_vm3, 1.0, %v1620_v15 }
 0x914   : > { %v1004_v32 = vsel %vm1003_vm2, %v1396_v31, 0.0 }
 0x915   : > { %1005 = vadd.xlane.f32.xlu0 %v1004_v32  ;;  %v964_v34 = vpop.permute.xlu0 %963 }
 0x916   : > { %vm965_vm4 = vcmp.eq.s32.totalorder %v1811_v33, %v964_v34 }
 0x917   : > { %v1395_v36 = vsel %vm965_vm4, 1.0, %v1620_v15  ;;  %v1573_v15 = vpop.eup (!%p1398_p7), %1572 }
 0x918   : > { %v968_v37 = vmul.f32 %v1395_v36, %v961_v35  ;;  %v1036_v19 = vmul.f32 (!%p1398_p7), %v1573_v15, %v1839_v18 }
 0x91a   : > { %v969_v38 = vsel %vm695_vm12, %v968_v37, 0.0  ;;  %v1037_v61 = vsub.f32 (!%p1398_p7), %v1036_v19, %v1395_v36 }
 0x91b   : > { %970 = vadd.xlane.f32.xlu1 %v969_v38 }
 0x91c   : > { %v1038_v62 = vmul.f32 (!%p1398_p7), 0.125, %v1037_v61 }
 0x91e   : > { %1472 = vmatprep.subr.mxu0 (!%p1398_p7), %v1038_v62  ;;  %v1168_v63 = vsel (!%p1398_p7), %vm695_vm12, %v1038_v62, 0.0  ;;  %1498 = vmatprep.subr.mxu1 (!%p1398_p7), %v1038_v62 }
 0x91f   : > { %v1169_v4 = vrot.slane (!%p1398_p7), %v1168_v63, 4  ;;  %1473 = vmatpush3.msra.mxu0 (!%p1398_p7), %v1038_v62  ;;  %1499 = vmatpush3.msra.mxu1 (!%p1398_p7), %v1038_v62 }
 0x921   : > { %v1170_v5 = vadd.f32 (!%p1398_p7), %v1169_v4, %v1168_v63 }
 0x923   : > { %v1171_v6 = vrot.slane (!%p1398_p7), %v1170_v5, 2 }
 0x925   : > { %v1172_v7 = vadd.f32 (!%p1398_p7), %v1171_v6, %v1170_v5 }
 0x942   : > { %1039 = vxpose.xlu0.b32.start.end [1/1] (short) (narrow) (!%p1398_p7), %v1734_v2, 32  ;;  %v1173_v2 = vrot.slane (!%p1398_p7), %v1172_v7, 1 }
 0x944   : > { %v1174_v8 = vadd.f32 (!%p1398_p7), %v1173_v2, %v1172_v7 }
 0x946   : > { %1179 = vst.msk [vmem:[%s421_s14] sm:$0x1] (!%p1398_p7), %vm869_vm15, %v1174_v8 }
 0x9a2   : > { %v1006_v39 = vpop.xlane.xlu0 %1005 }
 0x9a3   : > { %v1007_v40 = vrot.slane %v1006_v39, 4 }
 0x9a5   : > { %v1008_v41 = vadd.f32 %v1007_v40, %v1006_v39 }
 0x9a7   : > { %v1009_v42 = vrot.slane %v1008_v41, 2 }
 0x9a8   : > { %v971_v3 = vpop.xlane.xlu1 %970 }
 0x9a9   : > { %v972_v43 = vrot.slane %v971_v3, 4  ;;  %v1010_v45 = vadd.f32 %v1009_v42, %v1008_v41 }
 0x9ab   : > { %v973_v44 = vadd.f32 %v972_v43, %v971_v3  ;;  %v1011_v33 = vrot.slane %v1010_v45, 1 }
 0x9ad   : > { %v974_v46 = vrot.slane %v973_v44, 2  ;;  %v1012_v50 = vadd.f32 %v1011_v33, %v1010_v45 }
 0x9af   : > { %v975_v47 = vadd.f32 %v974_v46, %v973_v44 }
 0x9b1   : > { %v976_v48 = vrot.slane %v975_v47, 1 }
 0x9b3   : > { %v977_v49 = vadd.f32 %v976_v48, %v975_v47 }
 0x9b5   : > { %1504 = vpush %v977_v49 }
 0x9b6   : > { %1506 = vpush %v1012_v50 }
 0x9c2   : > { %v1055_v9 = vpop.trf.xlu0 (!%p1398_p7) }
 0x9c3   : > { %1474 = vmatprep.mubr.msk.f32.mxu0 (!%p1398_p7), %vm750_vm13, %v1055_v9 }
 0x9c6   : > { %v1056_v10 = vpop.trf.xlu0 (!%p1398_p7) }
 0x9c7   : > { %1475 = vmatmul.mubr.msk.f32.vlgmr.msra.gmra.mrb[0].mxu0 (!%p1398_p7), %vm750_vm13, %v1056_v10 }
 0x9ca   : > { %v1057_v11 = vpop.trf.xlu0 (!%p1398_p7) }
 0x9cb   : > { %1477 = vmatprep.mubr.msk.f32.mxu1 (!%p1398_p7), %vm750_vm13, %v1057_v11 }
 0x9ce   : > { %v1058_v12 = vpop.trf.xlu0 (!%p1398_p7) }
 0x9cf   : > { %1478 = vmatmul.mubr.msk.f32.vlgmr.msra.gmra.mrb[0].mxu1 (!%p1398_p7), %vm750_vm13, %v1058_v12 }
 0x9e6   : > { %s1505_s19 = spop %1504 }
 0x9e7   : > { %s979_s17 = ssub.f32 0.0, %s1505_s19  ;;  %s1507_s21 = spop %1506 }
 0x9e8   : > { %v1027_v54 = vstv %s1507_s21 }
 0x9e9   : > { %s982_s24 = smul.f32 0.125, %s979_s17  ;;  %v1028_v55 = vmul.f32 %v1397_v52, %v1027_v54 }
 0x9ea   : > { %1034 = sbr.rel (%p1398_p7) target bundleno = 2725 (0xaa5), region = 52 }
 0x9eb   : > { %v1022_v56 = vstv %s982_s24  ;;  %v1029_v58 = vadd.f32 %v1028_v55, %v1026_v53 }
 0x9ec   : > { %v1023_v59 = vmul.f32 %v1397_v52, %v1022_v56 }
 0x9ed   : > { %1030 = vst [vmem:[%s1732_s22] sm:$0xff] %v1029_v58 }
 0x9ee   : > { %v1024_v60 = vadd.f32 %v1023_v59, %v1021_v57 }
 0x9f0   : > { %1025 = vst [vmem:[%s1727_s18] sm:$0xff] %v1024_v60 }
 0xa9a   : > { %v1476_v13 = vpop.f32.mrb[0].mxu0 }
 0xa9b   : > { %1176 = vst.msk [vmem:[%s1741_s20 + $0x8] sm:$0xff] %vm695_vm12, %v1476_v13  ;;  %v1149_v14 = vpop.f32.mrb[1].mxu0 }
 0xa9c   : > { %1175 = vst.msk [vmem:[%s1741_s20] sm:$0xff] %vm695_vm12, %v1149_v14 }
 0xaa2   : > { %v1479_v16 = vpop.f32.mrb[0].mxu1 }
 0xaa3   : > { %1178 = vst.msk [vmem:[%s1741_s20 + $0x18] sm:$0xff] %vm695_vm12, %v1479_v16  ;;  %v1159_v17 = vpop.f32.mrb[1].mxu1 }
 0xaa4   : > { %1177 = vst.msk [vmem:[%s1741_s20 + $0x10] sm:$0xff] %vm695_vm12, %v1159_v17 }
 0xaa5 PF: > { %s20_s13 = sadd.s32 1, %s1612_s13   ;;  %s1905_s22 = sld [smem:[#allocation4_spill]] }
 0xaa6   : > { %p17_p8 = scmp.ge.s32.totalorder %s20_s13, 12   ;;  %s1906_s14 = sld [smem:[#allocation5_spill]] }
 0xaa7   : > { %s1907_s30 = smov %s1604_s11  ;;  %s1908_s10 = smov %s1608_s12 }
 0xaa8   :  { %19 = sbr.rel (!%p17_p8) target bundleno = 3 (0x3), region = 127 }
 0xaab   : > { %s1909_s11 = smov %s1905_s22 }
 0xaac   : > { %s1910_s12 = smov %s1906_s14 }

</bundles_post_ra>
